<compile_context>
chip_gen: v6e
topology: v6e:2x2x1
jax: 0.10.0
libtpu: 0.0.40
codegen_flags: <defaults>
</compile_context>

<pallas_src>
import jax
import jax.numpy as jnp
from jax.experimental import pallas as pl
from jax.experimental.pallas import tpu as pltpu


def _mlp_decoder_kernel(x_ref, w1_ref, b1_ref, w2_ref, b2_ref, w3_ref, b3_ref, o_ref):
    # Layer 1: Linear(z_dim, 256) + Tanh.  K = z_dim is tiny -> keep the dot in f32
    # (negligible cost, tighter agreement with the f32 reference).
    h1 = jnp.dot(x_ref[...], w1_ref[...], preferred_element_type=jnp.float32) + b1_ref[...]
    h1 = jnp.tanh(h1.astype(jnp.bfloat16))          # bf16 EUP path (v6e/v7x 2x tput)

    # Layer 2: Linear(256, 256) + Tanh  (bf16 operands, f32 MXU accumulation).
    h2 = jnp.dot(h1, w2_ref[...], preferred_element_type=jnp.float32) + b2_ref[...]
    h2 = jnp.tanh(h2.astype(jnp.bfloat16))

    # Layer 3: Linear(256, 784) + Sigmoid.
    # sigmoid(y) == 0.5 * (1 + tanh(y / 2))  -> a single EUP transcendental/elt.
    y = jnp.dot(h2, w3_ref[...], preferred_element_type=jnp.float32) + b3_ref[...]
    o_ref[...] = 0.5 * jnp.tanh(0.5 * y) + 0.5


def prepare_params(params):
    """One-time param conversion (hoisted out of the per-call forward pass).

    Weights W2/W3 -> bf16 MXU operands; W1 stays f32 (tiny K). Biases stay f32 and
    are reshaped to (1, out) so 1-D PyTorch-style biases also work.
    """
    w1, b1, w2, b2, w3, b3 = params
    return (
        jnp.asarray(w1, jnp.float32),
        jnp.asarray(b1, jnp.float32).reshape(1, -1),
        jnp.asarray(w2, jnp.bfloat16),
        jnp.asarray(b2, jnp.float32).reshape(1, -1),
        jnp.asarray(w3, jnp.bfloat16),
        jnp.asarray(b3, jnp.float32).reshape(1, -1),
    )


def mlp_decoder_forward(inputs, prepared, *, channels, image_size):
    """inputs: (B, ...) flattened to (B, z_dim). Returns (B, C, H, W) float32."""
    B = inputs.shape[0]
    x = inputs.reshape(B, -1)
    if x.dtype != jnp.float32:
        x = x.astype(jnp.float32)
    z_dim = x.shape[1]

    w1, b1, w2, b2, w3, b3 = prepared
    hidden = w1.shape[1]                      # 256
    out_dim = w3.shape[1]                     # 784

    # Batch tiling:
    #  - tiny batches: single full-extent block (exactly matches array dims).
    #  - otherwise: >=2 tiles (v7x megacore), TM a multiple of 16 (bf16 packing),
    #    capped at 1024 rows to amortize the ~0.35 us per-grid-step overhead.
    TM_MAX = 1024
    if B <= 16:
        TM = B
    else:
        half = -(-B // 2)                     # cdiv(B, 2) -> at least 2 tiles
        TM = min(TM_MAX, ((half + 15) // 16) * 16)
    n_tiles = pl.cdiv(B, TM)

    flops = 2 * B * (z_dim * hidden + hidden * hidden + hidden * out_dim)
    transcendentals = B * (hidden + hidden + out_dim)   # 1 tanh per activation elt
    bytes_accessed = (
        x.size * 4
        + sum(int(a.size) * a.dtype.itemsize for a in prepared)
        + B * out_dim * 4
    )

    # Weights/biases: full-array blocks with a constant index_map -> VMEM-resident
    # across the batch grid; only x / output tiles are pipelined.
    resident = lambda a: pl.BlockSpec(a.shape, lambda i: (0, 0))

    y_flat = pl.pallas_call(
        _mlp_decoder_kernel,
        out_shape=jax.ShapeDtypeStruct((B, out_dim), jnp.float32),
        grid=(n_tiles,),
        in_specs=[
            pl.BlockSpec((TM, z_dim), lambda i: (i, 0)),
            resident(w1), resident(b1),
            resident(w2), resident(b2),
            resident(w3), resident(b3),
        ],
        out_specs=pl.BlockSpec((TM, out_dim), lambda i: (i, 0)),
        compiler_params=pltpu.CompilerParams(
            dimension_semantics=("parallel",),      # shard tiles across v7x TCs
            vmem_limit_bytes=32 * 1024 * 1024,      # headroom for TM=1024 tiles
        ),
        cost_estimate=pl.CostEstimate(
            flops=flops,
            transcendentals=transcendentals,
            bytes_accessed=bytes_accessed,
        ),
    )(x, w1, b1, w2, b2, w3, b3)

    return y_flat.reshape(B, channels, image_size, image_size)


def init_params(key, z_dim, hidden=256, out_dim=784):
    """Deterministic init. Weights returned already transposed to (in, out), f32."""
    ks = jax.random.split(key, 6)

    def linear(kw, kb, fan_in, fan_out):
        # PyTorch nn.Linear default: U(-1/sqrt(fan_in), 1/sqrt(fan_in))
        bound = 1.0 / jnp.sqrt(fan_in)
        w = jax.random.uniform(kw, (fan_in, fan_out), jnp.float32, -bound, bound)
        b = jax.random.uniform(kb, (1, fan_out), jnp.float32, -bound, bound)
        return w, b

    w1, b1 = linear(ks[0], ks[1], z_dim, hidden)
    w2, b2 = linear(ks[2], ks[3], hidden, hidden)
    w3, b3 = linear(ks[4], ks[5], hidden, out_dim)
    return (w1, b1, w2, b2, w3, b3)


if __name__ == "__main__":
    # Config implied by the module: 784 = 1*28*28 -> MNIST-like decoder.
    B = 2
    z_dim = 8
    channels = 1
    image_size = 28

    key = jax.random.PRNGKey(0)
    k_in, k_par = jax.random.split(key)

    inputs = jax.random.normal(k_in, (B, z_dim), dtype=jnp.float32)
    params = init_params(k_par, z_dim)
    prepared = prepare_params(params)         # one-time weight conversion

    out = mlp_decoder_forward(inputs, prepared, channels=channels, image_size=image_size)
    out = jax.block_until_ready(out)

    # Reference in plain JAX (f32, same math as the PyTorch module).
    w1, b1, w2, b2, w3, b3 = params
    h = jnp.tanh(inputs @ w1 + b1)
    h = jnp.tanh(h @ w2 + b2)
    ref = jax.nn.sigmoid(h @ w3 + b3).reshape(B, channels, image_size, image_size)

    assert out.shape == (B, channels, image_size, image_size), out.shape
    # bf16 matmul operands / bf16 tanh with f32 accumulation -> relaxed tolerance.
    assert jnp.allclose(out, ref, atol=2e-2, rtol=2e-2), float(jnp.max(jnp.abs(out - ref)))

    print("KERNEL_OK")
</pallas_src>

<mosaic_0001>
module attributes {stable_mosaic.version = 11 : i64} {
  func.func @_mlp_decoder_kernel(%arg0: i32, %arg1: memref<2x8xf32, #tpu.memory_space<vmem>>, %arg2: memref<8x256xf32, #tpu.memory_space<vmem>>, %arg3: memref<1x256xf32, #tpu.memory_space<vmem>>, %arg4: memref<256x256xbf16, #tpu.memory_space<vmem>>, %arg5: memref<1x256xf32, #tpu.memory_space<vmem>>, %arg6: memref<256x784xbf16, #tpu.memory_space<vmem>>, %arg7: memref<1x784xf32, #tpu.memory_space<vmem>>, %arg8: memref<2x784xf32, #tpu.memory_space<vmem>>) attributes {dimension_semantics = [#tpu.dimension_semantics<parallel>], iteration_bounds = array<i64: 1>, scalar_prefetch = 0 : i64, scratch_operands = 0 : i64, tpu.core_type = #tpu.core_type<tc>, window_params = [{transform_indices = @transform_0, window_bounds = array<i64: 2, 8>}, {pipeline_mode = #tpu.pipeline_mode<synchronous>, transform_indices = @transform_1, window_bounds = array<i64: 8, 256>}, {pipeline_mode = #tpu.pipeline_mode<synchronous>, transform_indices = @transform_2, window_bounds = array<i64: 1, 256>}, {pipeline_mode = #tpu.pipeline_mode<synchronous>, transform_indices = @transform_3, window_bounds = array<i64: 256, 256>}, {pipeline_mode = #tpu.pipeline_mode<synchronous>, transform_indices = @transform_4, window_bounds = array<i64: 1, 256>}, {pipeline_mode = #tpu.pipeline_mode<synchronous>, transform_indices = @transform_5, window_bounds = array<i64: 256, 784>}, {pipeline_mode = #tpu.pipeline_mode<synchronous>, transform_indices = @transform_6, window_bounds = array<i64: 1, 784>}, {transform_indices = @transform_7, window_bounds = array<i64: 2, 784>}]} {
    %c0 = arith.constant 0 : index
    %c0_0 = arith.constant 0 : index
    %0 = vector.load %arg1[%c0, %c0_0] : memref<2x8xf32, #tpu.memory_space<vmem>>, vector<2x8xf32>
    %c0_1 = arith.constant 0 : index
    %c0_2 = arith.constant 0 : index
    %1 = vector.load %arg2[%c0_1, %c0_2] : memref<8x256xf32, #tpu.memory_space<vmem>>, vector<8x256xf32>
    %cst = arith.constant dense<0.000000e+00> : vector<2x256xf32>
    %2 = tpu.matmul %0, %1, %cst {dimension_numbers = #tpu.dot_dimension_numbers<[1], [0], [0], [1], [0, 0, 1, 1], [], []>} : vector<2x8xf32>, vector<8x256xf32>, vector<2x256xf32> -> vector<2x256xf32>
    %c0_3 = arith.constant 0 : index
    %c0_4 = arith.constant 0 : index
    %3 = vector.load %arg3[%c0_3, %c0_4] : memref<1x256xf32, #tpu.memory_space<vmem>>, vector<1x256xf32>
    %4 = vector.broadcast %3 : vector<1x256xf32> to vector<2x256xf32>
    %5 = arith.addf %2, %4 : vector<2x256xf32>
    %6 = arith.truncf %5 : vector<2x256xf32> to vector<2x256xbf16>
    %7 = math.tanh %6 : vector<2x256xbf16>
    %c0_5 = arith.constant 0 : index
    %c0_6 = arith.constant 0 : index
    %8 = vector.load %arg4[%c0_5, %c0_6] : memref<256x256xbf16, #tpu.memory_space<vmem>>, vector<256x256xbf16>
    %cst_7 = arith.constant dense<0.000000e+00> : vector<2x256xf32>
    %9 = tpu.matmul %7, %8, %cst_7 {dimension_numbers = #tpu.dot_dimension_numbers<[1], [0], [0], [1], [0, 0, 1, 1], [], []>} : vector<2x256xbf16>, vector<256x256xbf16>, vector<2x256xf32> -> vector<2x256xf32>
    %c0_8 = arith.constant 0 : index
    %c0_9 = arith.constant 0 : index
    %10 = vector.load %arg5[%c0_8, %c0_9] : memref<1x256xf32, #tpu.memory_space<vmem>>, vector<1x256xf32>
    %11 = vector.broadcast %10 : vector<1x256xf32> to vector<2x256xf32>
    %12 = arith.addf %9, %11 : vector<2x256xf32>
    %13 = arith.truncf %12 : vector<2x256xf32> to vector<2x256xbf16>
    %14 = math.tanh %13 : vector<2x256xbf16>
    %c0_10 = arith.constant 0 : index
    %c0_11 = arith.constant 0 : index
    %15 = vector.load %arg6[%c0_10, %c0_11] : memref<256x784xbf16, #tpu.memory_space<vmem>>, vector<256x784xbf16>
    %cst_12 = arith.constant dense<0.000000e+00> : vector<2x784xf32>
    %16 = tpu.matmul %14, %15, %cst_12 {dimension_numbers = #tpu.dot_dimension_numbers<[1], [0], [0], [1], [0, 0, 1, 1], [], []>} : vector<2x256xbf16>, vector<256x784xbf16>, vector<2x784xf32> -> vector<2x784xf32>
    %c0_13 = arith.constant 0 : index
    %c0_14 = arith.constant 0 : index
    %17 = vector.load %arg7[%c0_13, %c0_14] : memref<1x784xf32, #tpu.memory_space<vmem>>, vector<1x784xf32>
    %18 = vector.broadcast %17 : vector<1x784xf32> to vector<2x784xf32>
    %19 = arith.addf %16, %18 : vector<2x784xf32>
    %cst_15 = arith.constant 5.000000e-01 : f32
    %20 = vector.broadcast %cst_15 : f32 to vector<2x784xf32>
    %21 = arith.mulf %20, %19 : vector<2x784xf32>
    %22 = math.tanh %21 : vector<2x784xf32>
    %cst_16 = arith.constant 5.000000e-01 : f32
    %23 = vector.broadcast %cst_16 : f32 to vector<2x784xf32>
    %24 = arith.mulf %23, %22 : vector<2x784xf32>
    %cst_17 = arith.constant 5.000000e-01 : f32
    %25 = vector.broadcast %cst_17 : f32 to vector<2x784xf32>
    %26 = arith.addf %24, %25 : vector<2x784xf32>
    %c0_18 = arith.constant 0 : index
    %c0_19 = arith.constant 0 : index
    %27 = vector.load %arg8[%c0_18, %c0_19] : memref<2x784xf32, #tpu.memory_space<vmem>>, vector<2x784xf32>
    tpu.vector_store %arg8[%c0_18, %c0_19], %26 {strides = array<i32>} : memref<2x784xf32, #tpu.memory_space<vmem>>, vector<2x784xf32>,
    return
  }
  func.func @transform_0(%arg0: i32) -> (i32, i32) {
    %c0_i32 = arith.constant 0 : i32
    %c0_i32_0 = arith.constant 0 : i32
    return %arg0, %c0_i32 : i32, i32
  }
  func.func @transform_1(%arg0: i32) -> (i32, i32) {
    %c0_i32 = arith.constant 0 : i32
    %c0_i32_0 = arith.constant 0 : i32
    %c0_i32_1 = arith.constant 0 : i32
    return %c0_i32, %c0_i32_0 : i32, i32
  }
  func.func @transform_2(%arg0: i32) -> (i32, i32) {
    %c0_i32 = arith.constant 0 : i32
    %c0_i32_0 = arith.constant 0 : i32
    %c0_i32_1 = arith.constant 0 : i32
    return %c0_i32, %c0_i32_0 : i32, i32
  }
  func.func @transform_3(%arg0: i32) -> (i32, i32) {
    %c0_i32 = arith.constant 0 : i32
    %c0_i32_0 = arith.constant 0 : i32
    %c0_i32_1 = arith.constant 0 : i32
    return %c0_i32, %c0_i32_0 : i32, i32
  }
  func.func @transform_4(%arg0: i32) -> (i32, i32) {
    %c0_i32 = arith.constant 0 : i32
    %c0_i32_0 = arith.constant 0 : i32
    %c0_i32_1 = arith.constant 0 : i32
    return %c0_i32, %c0_i32_0 : i32, i32
  }
  func.func @transform_5(%arg0: i32) -> (i32, i32) {
    %c0_i32 = arith.constant 0 : i32
    %c0_i32_0 = arith.constant 0 : i32
    %c0_i32_1 = arith.constant 0 : i32
    return %c0_i32, %c0_i32_0 : i32, i32
  }
  func.func @transform_6(%arg0: i32) -> (i32, i32) {
    %c0_i32 = arith.constant 0 : i32
    %c0_i32_0 = arith.constant 0 : i32
    %c0_i32_1 = arith.constant 0 : i32
    return %c0_i32, %c0_i32_0 : i32, i32
  }
  func.func @transform_7(%arg0: i32) -> (i32, i32) {
    %c0_i32 = arith.constant 0 : i32
    %c0_i32_0 = arith.constant 0 : i32
    return %arg0, %c0_i32 : i32, i32
  }
}

</mosaic_0001>

<bundles_post_ra>
// kernel: tpu_custom_call.1
= control target key start
LH: loop header
LB: loop body
LE: loop exit
PB: predicated region body
PF: predicated region fallthrough
CT: control target
= control target key end

     0   :  { %vm43_vm0 = vcmask 64512   ;;  %v1788_v3 = vmov 0.0   ;;  %s2310_s0 = inlined_call_operand.vmem [shape: f32[2,8], index: 0, kind: input, shape index: {}]   ;;  %s2311_s1 = inlined_call_operand.vmem [shape: f32[8,256], index: 1, kind: input, shape index: {}]   ;;  %s2312_s2 = inlined_call_operand.vmem [shape: f32[1,256], index: 2, kind: input, shape index: {}]   ;;  %s2313_s3 = inlined_call_operand.vmem [shape: bf16[256,256], index: 3, kind: input, shape index: {}]   ;;  %s2314_s4 = inlined_call_operand.vmem [shape: f32[1,256], index: 4, kind: input, shape index: {}]   ;;  %s2315_s5 = inlined_call_operand.vmem [shape: bf16[256,784], index: 5, kind: input, shape index: {}]   ;;  %s2316_s6 = inlined_call_operand.vmem [shape: f32[1,784], index: 6, kind: input, shape index: {}]   ;;  %s2317_s7 = inlined_call_operand.hbm [shape: f32[2,784], index: 7, kind: output, shape index: {}]  }
   0x1   :  { %v30_v0 = vld [vmem:[%s2311_s1 + $0x8] sm:$0xff]  ;;  %v29_v1 = vld [vmem:[%s2311_s1] sm:$0xff]  ;;  %111 = vmatprep.mubr.f32.mxu0 %v1788_v3  ;;  %v1536_v4 = vld [vmem:[%s2313_s3 + $0x74] ss:$8 sps:$4 sm:$0xff]  }
   0x2   :  { %v28_v2 = vld [vmem:[%s2310_s0] sm:$0x3]  ;;  %77 = vmatprep.subr.mxu0 %v30_v0  ;;  %v1538_v5 = vld [vmem:[%s2313_s3 + $0x70] ss:$8 sps:$4 sm:$0xff]   ;;  %326 = vmatprep.subr.bf16.mxu1 %v1536_v4  ;;  %v1539_v6 = vld [vmem:[%s2313_s3 + $0x64] ss:$8 sps:$4 sm:$0xff]  }
   0x3   :  { %78 = vmatpush1.msra.mxu0 %v29_v1  ;;  %327 = vmatpush1.bf16.msra.mxu1 %v1538_v5  ;;  %v1541_v7 = vld [vmem:[%s2313_s3 + $0x60] ss:$8 sps:$4 sm:$0xff]   ;;  %v1542_v8 = vld [vmem:[%s2313_s3 + $0x54] ss:$8 sps:$4 sm:$0xff]   ;;  %v1544_v9 = vld [vmem:[%s2313_s3 + $0x50] ss:$8 sps:$4 sm:$0xff]  }
   0x4   :  { %1366 = vmatmul.mubr.msk.f32.vlgmr.msra.gmra.mxu0 %vm43_vm0, %v28_v2  ;;  %328 = vmatprep.subr.bf16.mxu1 %v1539_v6  ;;  %v1545_v10 = vld [vmem:[%s2313_s3 + $0x44] ss:$8 sps:$4 sm:$0xff]   ;;  %v1547_v11 = vld [vmem:[%s2313_s3 + $0x40] ss:$8 sps:$4 sm:$0xff]   ;;  %v1548_v12 = vld [vmem:[%s2313_s3 + $0x34] ss:$8 sps:$4 sm:$0xff]  }
   0x5   :  { %v1550_v13 = vld [vmem:[%s2313_s3 + $0x30] ss:$8 sps:$4 sm:$0xff]   ;;  %v1551_v14 = vld [vmem:[%s2313_s3 + $0x24] ss:$8 sps:$4 sm:$0xff]   ;;  %v1553_v15 = vld [vmem:[%s2313_s3 + $0x20] ss:$8 sps:$4 sm:$0xff]  }
   0x6   :  { %v1554_v16 = vld [vmem:[%s2313_s3 + $0x14] ss:$8 sps:$4 sm:$0xff]   ;;  %v1556_v17 = vld [vmem:[%s2313_s3 + $0x10] ss:$8 sps:$4 sm:$0xff]   ;;  %v1557_v18 = vld [vmem:[%s2313_s3 + $0x4] ss:$8 sps:$4 sm:$0xff]  }
   0x7   :  { %329 = vmatpush1.bf16.msra.mxu1 %v1541_v7  ;;  %v1559_v19 = vld [vmem:[%s2313_s3] ss:$8 sps:$4 sm:$0xff]   ;;  %v1560_v20 = vld [vmem:[%s2313_s3 + $0xf4] ss:$8 sps:$4 sm:$0xff]   ;;  %v1562_v21 = vld [vmem:[%s2313_s3 + $0xf0] ss:$8 sps:$4 sm:$0xff]  }
   0x8   :  { %330 = vmatprep.subr.bf16.mxu1 %v1542_v8  ;;  %v1563_v22 = vld [vmem:[%s2313_s3 + $0xe4] ss:$8 sps:$4 sm:$0xff]   ;;  %v1565_v23 = vld [vmem:[%s2313_s3 + $0xe0] ss:$8 sps:$4 sm:$0xff]   ;;  %v1566_v24 = vld [vmem:[%s2313_s3 + $0xd4] ss:$8 sps:$4 sm:$0xff]  }
   0xb   :  { %331 = vmatpush1.bf16.msra.mxu1 %v1544_v9 }
   0xc   :  { %332 = vmatprep.subr.bf16.mxu1 %v1545_v10 }
   0xf   :  { %333 = vmatpush1.bf16.msra.mxu1 %v1547_v11 }
  0x10   :  { %334 = vmatprep.subr.bf16.mxu1 %v1548_v12 }
  0x13   :  { %335 = vmatpush1.bf16.msra.mxu1 %v1550_v13 }
  0x14   :  { %336 = vmatprep.subr.bf16.mxu1 %v1551_v14 }
  0x17   :  { %337 = vmatpush1.bf16.msra.mxu1 %v1553_v15 }
  0x18   :  { %338 = vmatprep.subr.bf16.mxu1 %v1554_v16 }
  0x1b   :  { %339 = vmatpush1.bf16.msra.mxu1 %v1556_v17 }
  0x1c   :  { %340 = vmatprep.subr.bf16.mxu1 %v1557_v18 }
  0x1f   :  { %341 = vmatpush1.bf16.msra.mxu1 %v1559_v19 }
  0x20   :  { %342 = vmatprep.subr.bf16.mxu1 %v1560_v20 }
  0x23   :  { %343 = vmatpush2.bf16.msra.mxu1 %v1562_v21 }
  0x24   :  { %344 = vmatprep.subr.bf16.mxu1 %v1563_v22 }
  0x27   :  { %345 = vmatpush2.bf16.msra.mxu1 %v1565_v23 }
  0x28   :  { %346 = vmatprep.subr.bf16.mxu1 %v1566_v24 }
  0x29   :  { %12 = vsyncpa [#allocation3], 0  ;;  %v1568_v25 = vld [vmem:[%s2313_s3 + $0xd0] ss:$8 sps:$4 sm:$0xff]   ;;  %v1569_v26 = vld [vmem:[%s2313_s3 + $0xc4] ss:$8 sps:$4 sm:$0xff]   ;;  %v33_v59 = vlaneseq }
  0x2a   :  { %v1571_v27 = vld [vmem:[%s2313_s3 + $0xc0] ss:$8 sps:$4 sm:$0xff]   ;;  %v1572_v28 = vld [vmem:[%s2313_s3 + $0xb4] ss:$8 sps:$4 sm:$0xff]   ;;  %v1574_v29 = vld [vmem:[%s2313_s3 + $0xb0] ss:$8 sps:$4 sm:$0xff]  }
  0x2b   :  { %347 = vmatpush2.bf16.msra.mxu1 %v1568_v25  ;;  %v1575_v30 = vld [vmem:[%s2313_s3 + $0xa4] ss:$8 sps:$4 sm:$0xff]   ;;  %v1577_v31 = vld [vmem:[%s2313_s3 + $0xa0] ss:$8 sps:$4 sm:$0xff]   ;;  %v1578_v32 = vld [vmem:[%s2313_s3 + $0x94] ss:$8 sps:$4 sm:$0xff]  }
  0x2c   :  { %348 = vmatprep.subr.bf16.mxu1 %v1569_v26  ;;  %v1580_v33 = vld [vmem:[%s2313_s3 + $0x90] ss:$8 sps:$4 sm:$0xff]   ;;  %v1581_v34 = vld [vmem:[%s2313_s3 + $0x84] ss:$8 sps:$4 sm:$0xff]   ;;  %v1583_v35 = vld [vmem:[%s2313_s3 + $0x80] ss:$8 sps:$4 sm:$0xff]  }
  0x2d   :  { %v1584_v36 = vld [vmem:[%s2315_s5 + $0x188] ss:$28 sps:$4 sm:$0xff]   ;;  %v1589_v38 = vld [vmem:[%s2315_s5 + $0x194] ss:$28 sps:$4 sm:$0xff]   ;;  %v1598_v41 = vld [vmem:[%s2315_s5 + $0x11c] ss:$28 sps:$4 sm:$0xff]  }
  0x2e   :  { %v1586_v37 = vld [vmem:[%s2315_s5 + $0x18c] ss:$28 sps:$4 sm:$0xff]   ;;  %v1592_v39 = vld [vmem:[%s2315_s5 + $0x154] ss:$28 sps:$4 sm:$0xff]   ;;  %v1604_v43 = vld [vmem:[%s2315_s5 + $0xe4] ss:$28 sps:$4 sm:$0xff]  }
  0x2f   :  { %349 = vmatpush2.bf16.msra.mxu1 %v1571_v27  ;;  %1112 = vmatprep.subr.bf16.mxu0 %v1586_v37  ;;  %v1590_v40 = vld [vmem:[%s2315_s5 + $0x150] ss:$28 sps:$4 sm:$0xff]   ;;  %v1596_v42 = vld [vmem:[%s2315_s5 + $0x118] ss:$28 sps:$4 sm:$0xff]   ;;  %v1602_v44 = vld [vmem:[%s2315_s5 + $0xe0] ss:$28 sps:$4 sm:$0xff]  }
  0x30   :  { %350 = vmatprep.subr.bf16.mxu1 %v1572_v28  ;;  %1113 = vmatpush1.bf16.msra.mxu0 %v1584_v36  ;;  %v1610_v45 = vld [vmem:[%s2315_s5 + $0xac] ss:$28 sps:$4 sm:$0xff]   ;;  %v1616_v47 = vld [vmem:[%s2315_s5 + $0x74] ss:$28 sps:$4 sm:$0xff]   ;;  %v1622_v49 = vld [vmem:[%s2315_s5 + $0x3c] ss:$28 sps:$4 sm:$0xff]  }
  0x31   :  { %1114 = vmatprep.subr.bf16.mxu0 %v1592_v39  ;;  %v1608_v46 = vld [vmem:[%s2315_s5 + $0xa8] ss:$28 sps:$4 sm:$0xff]   ;;  %v1614_v48 = vld [vmem:[%s2315_s5 + $0x70] ss:$28 sps:$4 sm:$0xff]   ;;  %v1620_v50 = vld [vmem:[%s2315_s5 + $0x38] ss:$28 sps:$4 sm:$0xff]  }
  0x32   :  { %v1628_v51 = vld [vmem:[%s2315_s5 + $0x4] ss:$28 sps:$4 sm:$0xff]   ;;  %v1634_v53 = vld [vmem:[%s2315_s5 + $0x34c] ss:$28 sps:$4 sm:$0xff]   ;;  %v1640_v55 = vld [vmem:[%s2315_s5 + $0x314] ss:$28 sps:$4 sm:$0xff]  }
  0x33   :  { %351 = vmatpush2.bf16.msra.mxu1 %v1574_v29  ;;  %v1626_v52 = vld [vmem:[%s2315_s5] ss:$28 sps:$4 sm:$0xff]   ;;  %v1632_v54 = vld [vmem:[%s2315_s5 + $0x348] ss:$28 sps:$4 sm:$0xff]   ;;  %v1638_v56 = vld [vmem:[%s2315_s5 + $0x310] ss:$28 sps:$4 sm:$0xff]  }
  0x34   :  { %352 = vmatprep.subr.bf16.mxu1 %v1575_v30  ;;  %1115 = vmatpush1.bf16.msra.mxu0 %v1590_v40  ;;  %v1646_v57 = vld [vmem:[%s2315_s5 + $0x2dc] ss:$28 sps:$4 sm:$0xff]   ;;  %v2005_v60 = vshrl.u32 %v33_v59, 7  ;;  %v31_v62 = vld [vmem:[%s2312_s2] sm:$0x3]  ;;  %vm1346_vm1 = vcmask 1041408  }
  0x35   :  { %1116 = vmatprep.subr.bf16.mxu0 %v1598_v41  ;;  %v1644_v58 = vld [vmem:[%s2315_s5 + $0x2d8] ss:$28 sps:$4 sm:$0xff]   ;;  %v1587_v8 = vld [vmem:[%s2315_s5 + $0x190] ss:$28 sps:$4 sm:$0xff]   ;;  %v1601_v13 = vld [vmem:[%s2315_s5 + $0x124] ss:$28 sps:$4 sm:$0xff]  }
  0x36   :  { %v2008_v61 = vsub.s32 0, %v2005_v60  ;;  %v2014_v63 = vsub.s32 1, %v2005_v60  ;;  %v1595_v10 = vld [vmem:[%s2315_s5 + $0x15c] ss:$28 sps:$4 sm:$0xff]   ;;  %v1607_v15 = vld [vmem:[%s2315_s5 + $0xec] ss:$28 sps:$4 sm:$0xff]  }
  0x37   :  { %353 = vmatpush2.bf16.msra.mxu1 %v1577_v31  ;;  %v1593_v12 = vld [vmem:[%s2315_s5 + $0x158] ss:$28 sps:$4 sm:$0xff]   ;;  %v1599_v14 = vld [vmem:[%s2315_s5 + $0x120] ss:$28 sps:$4 sm:$0xff]   ;;  %v1605_v16 = vld [vmem:[%s2315_s5 + $0xe8] ss:$28 sps:$4 sm:$0xff]  }
  0x38   :  { %354 = vmatprep.subr.bf16.mxu1 %v1578_v32  ;;  %1117 = vmatpush1.bf16.msra.mxu0 %v1596_v42  ;;  %v36_v0 = vrot.slane %v31_v62, %v2008_v61  ;;  %v40_v1 = vrot.slane %v31_v62, %v2014_v63  ;;  %v1613_v17 = vld [vmem:[%s2315_s5 + $0xb4] ss:$28 sps:$4 sm:$0xff]   ;;  %v1619_v19 = vld [vmem:[%s2315_s5 + $0x7c] ss:$28 sps:$4 sm:$0xff]   ;;  %v1625_v21 = vld [vmem:[%s2315_s5 + $0x44] ss:$28 sps:$4 sm:$0xff]  }
  0x39   :  { %1118 = vmatprep.subr.bf16.mxu0 %v1604_v43  ;;  %v1611_v18 = vld [vmem:[%s2315_s5 + $0xb0] ss:$28 sps:$4 sm:$0xff]   ;;  %v1617_v20 = vld [vmem:[%s2315_s5 + $0x78] ss:$28 sps:$4 sm:$0xff]   ;;  %v1623_v22 = vld [vmem:[%s2315_s5 + $0x40] ss:$28 sps:$4 sm:$0xff]  }
  0x3a   :  { %v1631_v23 = vld [vmem:[%s2315_s5 + $0xc] ss:$28 sps:$4 sm:$0xff]   ;;  %v1637_v25 = vld [vmem:[%s2315_s5 + $0x354] ss:$28 sps:$4 sm:$0xff]   ;;  %v1643_v27 = vld [vmem:[%s2315_s5 + $0x31c] ss:$28 sps:$4 sm:$0xff]  }
  0x3b   :  { %355 = vmatpush2.bf16.msra.mxu1 %v1580_v33  ;;  %v1629_v24 = vld [vmem:[%s2315_s5 + $0x8] ss:$28 sps:$4 sm:$0xff]   ;;  %v1635_v26 = vld [vmem:[%s2315_s5 + $0x350] ss:$28 sps:$4 sm:$0xff]   ;;  %v1641_v28 = vld [vmem:[%s2315_s5 + $0x318] ss:$28 sps:$4 sm:$0xff]  }
  0x3c   :  { %356 = vmatprep.subr.bf16.mxu1 %v1581_v34  ;;  %1119 = vmatpush1.bf16.msra.mxu0 %v1602_v44  ;;  %v1649_v29 = vld [vmem:[%s2315_s5 + $0x2e4] ss:$28 sps:$4 sm:$0xff]   ;;  %v1655_v32 = vld [vmem:[%s2315_s5 + $0x2ac] ss:$28 sps:$4 sm:$0xff]   ;;  %v1661_v36 = vld [vmem:[%s2315_s5 + $0x274] ss:$28 sps:$4 sm:$0xff]  }
  0x3d   :  { %1120 = vmatprep.subr.bf16.mxu0 %v1610_v45  ;;  %v1647_v30 = vld [vmem:[%s2315_s5 + $0x2e0] ss:$28 sps:$4 sm:$0xff]   ;;  %v1653_v34 = vld [vmem:[%s2315_s5 + $0x2a8] ss:$28 sps:$4 sm:$0xff]   ;;  %v1662_v39 = vld [vmem:[%s2315_s5 + $0x230] ss:$28 sps:$4 sm:$0xff]  }
  0x3e   :  { %v1652_v31 = vld [vmem:[%s2315_s5 + $0x2a4] ss:$28 sps:$4 sm:$0xff]   ;;  %v1664_v40 = vld [vmem:[%s2315_s5 + $0x234] ss:$28 sps:$4 sm:$0xff]   ;;  %v1667_v42 = vld [vmem:[%s2315_s5 + $0x23c] ss:$28 sps:$4 sm:$0xff]  }
  0x3f   :  { %357 = vmatpush2.bf16.msra.mxu1 %v1583_v35  ;;  %v1650_v33 = vld [vmem:[%s2315_s5 + $0x2a0] ss:$28 sps:$4 sm:$0xff]   ;;  %v1658_v35 = vld [vmem:[%s2315_s5 + $0x26c] ss:$28 sps:$4 sm:$0xff]   ;;  %v1665_v41 = vld [vmem:[%s2315_s5 + $0x238] ss:$28 sps:$4 sm:$0xff]  }
  0x40   :  { %1153 = vmatprep.subr.bf16.mxu1 %v1589_v38  ;;  %1121 = vmatpush1.bf16.msra.mxu0 %v1608_v46  ;;  %v1656_v37 = vld [vmem:[%s2315_s5 + $0x268] ss:$28 sps:$4 sm:$0xff]   ;;  %v1659_v38 = vld [vmem:[%s2315_s5 + $0x270] ss:$28 sps:$4 sm:$0xff]   ;;  %v1670_v43 = vld [vmem:[%s2315_s5 + $0x1fc] ss:$28 sps:$4 sm:$0xff]  }
  0x41   :  { %1122 = vmatprep.subr.bf16.mxu0 %v1616_v47  ;;  %v1673_v44 = vld [vmem:[%s2315_s5 + $0x204] ss:$28 sps:$4 sm:$0xff]   ;;  %v1668_v45 = vld [vmem:[%s2315_s5 + $0x1f8] ss:$28 sps:$4 sm:$0xff]   ;;  %vm1347_vm2 = vcmask 1043458   ;;  %vm1349_vm4 = vcmask 128004  }
  0x42   :  { %v1671_v46 = vld [vmem:[%s2315_s5 + $0x200] ss:$28 sps:$4 sm:$0xff]   ;;  %vm1348_vm3 = vmor %vm1347_vm2, %vm1346_vm1 }
  0x43   :  { %v1676_v47 = vld [vmem:[%s2315_s5 + $0x1c4] ss:$28 sps:$4 sm:$0xff]   ;;  %vm1350_vm5 = vmor %vm1349_vm4, %vm1348_vm3 }
  0x44   :  { %1123 = vmatpush1.bf16.msra.mxu0 %v1614_v48  ;;  %v1679_v48 = vld [vmem:[%s2315_s5 + $0x1cc] ss:$28 sps:$4 sm:$0xff]  }
  0x45   :  { %1124 = vmatprep.subr.bf16.mxu0 %v1622_v49  ;;  %v1674_v49 = vld [vmem:[%s2315_s5 + $0x1c0] ss:$28 sps:$4 sm:$0xff]  }
  0x48   :  { %1125 = vmatpush1.bf16.msra.mxu0 %v1620_v50  ;;  %v1677_v50 = vld [vmem:[%s2315_s5 + $0x1c8] ss:$28 sps:$4 sm:$0xff]  }
  0x49   :  { %1126 = vmatprep.subr.bf16.mxu0 %v1628_v51  ;;  %v1682_v51 = vld [vmem:[%s2315_s5 + $0x19c] ss:$28 sps:$4 sm:$0xff]  }
  0x4c   :  { %1127 = vmatpush1.bf16.msra.mxu0 %v1626_v52  ;;  %v1683_v52 = vld [vmem:[%s2315_s5 + $0x360] ss:$28 sps:$4 sm:$0xff]  }
  0x4d   :  { %1128 = vmatprep.subr.bf16.mxu0 %v1634_v53  ;;  %v154_v53 = vld [vmem:[%s2314_s4] sm:$0x3] }
  0x50   :  { %1129 = vmatpush2.bf16.msra.mxu0 %v1632_v54  ;;  %v159_v54 = vrot.slane %v154_v53, %v2008_v61 }
  0x51   :  { %1130 = vmatprep.subr.bf16.mxu0 %v1640_v55  ;;  %v163_v55 = vrot.slane %v154_v53, %v2014_v63  ;;  %v515_v53 = vsub.s32 3, %v2005_v60 }
  0x54   :  { %1131 = vmatpush2.bf16.msra.mxu0 %v1638_v56 }
  0x55   :  { %1132 = vmatprep.subr.bf16.mxu0 %v1646_v57 }
  0x58   :  { %1133 = vmatpush2.bf16.msra.mxu0 %v1644_v58 }
  0x59   :  { %1134 = vmatprep.subr.bf16.mxu0 %v1652_v31  ;;  %v1717_v31 = vld [vmem:[%s2315_s5 + $0x14] ss:$28 sps:$4 sm:$0xff]  }
  0x5c   :  { %1135 = vmatpush2.bf16.msra.mxu0 %v1650_v33  ;;  %v1715_v33 = vld [vmem:[%s2315_s5 + $0x10] ss:$28 sps:$4 sm:$0xff]  }
  0x5d   :  { %1136 = vmatprep.subr.bf16.mxu0 %v1658_v35  ;;  %v1722_v35 = vld [vmem:[%s2315_s5 + $0x35c] ss:$28 sps:$4 sm:$0xff]  }
  0x60   :  { %1137 = vmatpush2.bf16.msra.mxu0 %v1656_v37  ;;  %v1725_v37 = vld [vmem:[%s2315_s5 + $0x324] ss:$28 sps:$4 sm:$0xff]  }
  0x61   :  { %1138 = vmatprep.subr.bf16.mxu0 %v1664_v40  ;;  %v1726_v40 = vld [vmem:[%s2315_s5 + $0x2e8] ss:$28 sps:$4 sm:$0xff]  }
  0x64   :  { %1139 = vmatpush2.bf16.msra.mxu0 %v1662_v39  ;;  %v1728_v39 = vld [vmem:[%s2315_s5 + $0x2ec] ss:$28 sps:$4 sm:$0xff]  }
  0x65   :  { %1140 = vmatprep.subr.bf16.mxu0 %v1670_v43  ;;  %v1734_v43 = vld [vmem:[%s2315_s5 + $0x27c] ss:$28 sps:$4 sm:$0xff]  }
  0x68   :  { %1141 = vmatpush2.bf16.msra.mxu0 %v1668_v45  ;;  %v1737_v45 = vld [vmem:[%s2315_s5 + $0x244] ss:$28 sps:$4 sm:$0xff]  }
  0x69   :  { %1142 = vmatprep.subr.bf16.mxu0 %v1676_v47  ;;  %v1740_v47 = vld [vmem:[%s2315_s5 + $0x20c] ss:$28 sps:$4 sm:$0xff]  }
  0x6c   :  { %1143 = vmatpush2.bf16.msra.mxu0 %v1674_v49  ;;  %v1743_v49 = vld [vmem:[%s2315_s5 + $0x1d4] ss:$28 sps:$4 sm:$0xff]  }
  0x6d   :  { %1194 = vmatprep.subr.bf16.mxu0 %v1682_v51  ;;  %v511_v51 = vsub.s32 2, %v2005_v60 }
  0xc4   :  { %v113_v2 = vpop.f32.mrf.mxu0 }
  0xc5   :  { %v114_v3 = vadd.f32 %v113_v2, %v36_v0 }
  0xc6   :  { %v115_v4 = vpop.f32.mrf.mxu0 }
  0xc7   :  { %v116_v5 = vadd.f32 %v115_v4, %v40_v1  ;;  %v118_v6 = vpack.c.bf16 %v114_v3, %v114_v3  ;;  %v1680_v3 = vld [vmem:[%s2315_s5 + $0x198] ss:$28 sps:$4 sm:$0xff]   ;;  %v1684_v4 = vld [vmem:[%s2315_s5 + $0x1a0] ss:$28 sps:$4 sm:$0xff]  }
  0xc9   :  { %v119_v7 = vpack.c.bf16 %v116_v5, %v116_v5 }
  0xcb   :  { %1744 = vtanh.bf16 %v119_v7  ;;  %v1687_v7 = vld [vmem:[%s2315_s5 + $0x164] ss:$28 sps:$4 sm:$0xff]  }
  0xcc   :  { %1746 = vtanh.bf16 %v118_v6 }
  0xd9   :  { %v1745_v9 = vpop.eup %1744 }
  0xda   :  { %v1747_v11 = vpop.eup %1746  ;;  %358 = vmatprep.mubr.bf16.mxu1 %v1745_v9  ;;  %v1685_v9 = vld [vmem:[%s2315_s5 + $0x160] ss:$28 sps:$4 sm:$0xff]  }
  0xdb   :  { %359 = vmatmul.mubr.bf16.vlgmr.msra.gmra.mxu1 %v1747_v11  ;;  %v1692_v11 = vld [vmem:[%s2315_s5 + $0x12c] ss:$28 sps:$4 sm:$0xff]  }
  0xdc   :  { %1154 = vmatpush1.bf16.msra.mxu1 %v1587_v8  ;;  %v1688_v8 = vld [vmem:[%s2315_s5 + $0x328] ss:$28 sps:$4 sm:$0xff]  }
  0xdd   :  { %1155 = vmatprep.subr.bf16.mxu1 %v1595_v10  ;;  %v1689_v10 = vld [vmem:[%s2315_s5 + $0x168] ss:$28 sps:$4 sm:$0xff]  }
  0xe0   :  { %1156 = vmatpush1.bf16.msra.mxu1 %v1593_v12  ;;  %v1693_v12 = vld [vmem:[%s2315_s5 + $0x2f0] ss:$28 sps:$4 sm:$0xff]  }
  0xe1   :  { %1157 = vmatprep.subr.bf16.mxu1 %v1601_v13  ;;  %v1690_v13 = vld [vmem:[%s2315_s5 + $0x128] ss:$28 sps:$4 sm:$0xff]  }
  0xe4   :  { %1158 = vmatpush1.bf16.msra.mxu1 %v1599_v14  ;;  %v1694_v14 = vld [vmem:[%s2315_s5 + $0x130] ss:$28 sps:$4 sm:$0xff]  }
  0xe5   :  { %1159 = vmatprep.subr.bf16.mxu1 %v1607_v15  ;;  %v1697_v15 = vld [vmem:[%s2315_s5 + $0xf4] ss:$28 sps:$4 sm:$0xff]  }
  0xe8   :  { %1160 = vmatpush1.bf16.msra.mxu1 %v1605_v16  ;;  %v1698_v16 = vld [vmem:[%s2315_s5 + $0x2b8] ss:$28 sps:$4 sm:$0xff]  }
  0xe9   :  { %1161 = vmatprep.subr.bf16.mxu1 %v1613_v17  ;;  %v1695_v17 = vld [vmem:[%s2315_s5 + $0xf0] ss:$28 sps:$4 sm:$0xff]  }
  0xec   :  { %1162 = vmatpush1.bf16.msra.mxu1 %v1611_v18  ;;  %v1699_v18 = vld [vmem:[%s2315_s5 + $0xf8] ss:$28 sps:$4 sm:$0xff]  }
  0xed   :  { %1163 = vmatprep.subr.bf16.mxu1 %v1619_v19  ;;  %v1702_v19 = vld [vmem:[%s2315_s5 + $0xbc] ss:$28 sps:$4 sm:$0xff]  }
  0xf0   :  { %1164 = vmatpush1.bf16.msra.mxu1 %v1617_v20  ;;  %v1703_v20 = vld [vmem:[%s2315_s5 + $0x280] ss:$28 sps:$4 sm:$0xff]  }
  0xf1   :  { %1165 = vmatprep.subr.bf16.mxu1 %v1625_v21  ;;  %v1700_v21 = vld [vmem:[%s2315_s5 + $0xb8] ss:$28 sps:$4 sm:$0xff]  }
  0xf4   :  { %1166 = vmatpush1.bf16.msra.mxu1 %v1623_v22  ;;  %v1704_v22 = vld [vmem:[%s2315_s5 + $0xc0] ss:$28 sps:$4 sm:$0xff]  }
  0xf5   :  { %1167 = vmatprep.subr.bf16.mxu1 %v1631_v23  ;;  %v1707_v23 = vld [vmem:[%s2315_s5 + $0x84] ss:$28 sps:$4 sm:$0xff]  }
  0xf8   :  { %1168 = vmatpush1.bf16.msra.mxu1 %v1629_v24  ;;  %v1708_v24 = vld [vmem:[%s2315_s5 + $0x248] ss:$28 sps:$4 sm:$0xff]  }
  0xf9   :  { %1169 = vmatprep.subr.bf16.mxu1 %v1637_v25  ;;  %v1705_v25 = vld [vmem:[%s2315_s5 + $0x80] ss:$28 sps:$4 sm:$0xff]  }
  0xfc   :  { %1170 = vmatpush2.bf16.msra.mxu1 %v1635_v26  ;;  %v1709_v26 = vld [vmem:[%s2315_s5 + $0x88] ss:$28 sps:$4 sm:$0xff]  }
  0xfd   :  { %1171 = vmatprep.subr.bf16.mxu1 %v1643_v27  ;;  %v1712_v27 = vld [vmem:[%s2315_s5 + $0x4c] ss:$28 sps:$4 sm:$0xff]  }
 0x100   :  { %1172 = vmatpush2.bf16.msra.mxu1 %v1641_v28  ;;  %v1713_v28 = vld [vmem:[%s2315_s5 + $0x210] ss:$28 sps:$4 sm:$0xff]  }
 0x101   :  { %1173 = vmatprep.subr.bf16.mxu1 %v1649_v29  ;;  %v1710_v29 = vld [vmem:[%s2315_s5 + $0x48] ss:$28 sps:$4 sm:$0xff]  }
 0x104   :  { %1174 = vmatpush2.bf16.msra.mxu1 %v1647_v30  ;;  %v1714_v30 = vld [vmem:[%s2315_s5 + $0x50] ss:$28 sps:$4 sm:$0xff]  }
 0x105   :  { %1175 = vmatprep.subr.bf16.mxu1 %v1655_v32  ;;  %v1718_v32 = vld [vmem:[%s2315_s5 + $0x1d8] ss:$28 sps:$4 sm:$0xff]  }
 0x108   :  { %1176 = vmatpush2.bf16.msra.mxu1 %v1653_v34  ;;  %v1719_v34 = vld [vmem:[%s2315_s5 + $0x18] ss:$28 sps:$4 sm:$0xff]  }
 0x109   :  { %1177 = vmatprep.subr.bf16.mxu1 %v1661_v36  ;;  %v1720_v36 = vld [vmem:[%s2315_s5 + $0x358] ss:$28 sps:$4 sm:$0xff]  }
 0x10c   :  { %1178 = vmatpush2.bf16.msra.mxu1 %v1659_v38  ;;  %v1723_v38 = vld [vmem:[%s2315_s5 + $0x320] ss:$28 sps:$4 sm:$0xff]  }
 0x10d   :  { %1179 = vmatprep.subr.bf16.mxu1 %v1667_v42  ;;  %v1729_v42 = vld [vmem:[%s2315_s5 + $0x2b0] ss:$28 sps:$4 sm:$0xff]  }
 0x110   :  { %1180 = vmatpush2.bf16.msra.mxu1 %v1665_v41  ;;  %v1731_v41 = vld [vmem:[%s2315_s5 + $0x2b4] ss:$28 sps:$4 sm:$0xff]  }
 0x111   :  { %1181 = vmatprep.subr.bf16.mxu1 %v1673_v44  ;;  %v1732_v44 = vld [vmem:[%s2315_s5 + $0x278] ss:$28 sps:$4 sm:$0xff]  }
 0x114   :  { %1182 = vmatpush2.bf16.msra.mxu1 %v1671_v46  ;;  %v1735_v46 = vld [vmem:[%s2315_s5 + $0x240] ss:$28 sps:$4 sm:$0xff]  }
 0x115   :  { %1183 = vmatprep.subr.bf16.mxu1 %v1679_v48  ;;  %v1738_v48 = vld [vmem:[%s2315_s5 + $0x208] ss:$28 sps:$4 sm:$0xff]  }
 0x118   :  { %1184 = vmatpush2.bf16.msra.mxu1 %v1677_v50  ;;  %v1741_v50 = vld [vmem:[%s2315_s5 + $0x1d0] ss:$28 sps:$4 sm:$0xff]   ;;  %s1790_s5 = smov [#allocation2]  }
 0x119   :  { %1511 = vmatprep.subr.bf16.mxu1 %v1683_v52  ;;  %v499_v52 = vld [vmem:[%s2316_s6] sm:$0x7f]  ;;  %s1358_s6 = sshll.u32 %s1790_s5, 4  ;;  %s1359_s6 = int_to_ptr.vmem [resolvable:$true] %s1358_s6 }
 0x11a   :  { %s1766_s29 = scalar_lea.vmem %s1359_s6, 224  ;;  %p1771_p1 = scmp.lt.s32.totalorder %s1359_s6, %s1359_s6 }
 0x11b   :  { %p1767_p0 = scmp.ne.s32.totalorder %s1359_s6, %s1766_s29  ;;  %p1772_p2 = scmp.lt.s32.totalorder %s1766_s29, %s1766_s29 }
 0x11d   :  { %p1773_p3 = por %p1772_p2, %p1771_p1 }
 0x11f   :  { %p1774_p4 = pnand %p1773_p3, %p1767_p0 }
 0x19b   :  { %v360_v56 = vpop.f32.mrf.mxu1 }
 0x19c   :  { %v361_v57 = vadd.f32 %v360_v56, %v159_v54  ;;  %v504_v54 = vrot.slane %v499_v52, %v2008_v61  ;;  %v508_v56 = vrot.slane %v499_v52, %v2014_v63  ;;  %v1789_v63 = vmov 1983009808  }
 0x19d   :  { %v362_v58 = vpop.f32.mrf.mxu1 }
 0x19e   :  { %v363_v59 = vadd.f32 %v362_v58, %v163_v55  ;;  %v367_v62 = vpack.c.bf16 %v361_v57, %v361_v57  ;;  %v512_v55 = vrot.slane %v499_v52, %v511_v51  ;;  %v516_v57 = vrot.slane %v499_v52, %v515_v53 }
 0x19f   :  { %v364_v0 = vpop.f32.mrf.mxu1 }
 0x1a0   :  { %v368_v1 = vpack.c.bf16 %v363_v59, %v363_v59 }
 0x1a1   :  { %v365_v2 = vpop.f32.mrf.mxu1 }
 0x1a2   :  { %1748 = vtanh.bf16 %v368_v1 }
 0x1a3   :  { %1750 = vtanh.bf16 %v367_v62 }
 0x1b0   :  { %v1749_v5 = vpop.eup %1748 }
 0x1b1   :  { %v2158_v6 = vpop.eup %1750  ;;  %1144 = vmatprep.mubr.bf16.mxu0 %v1749_v5  ;;  %1185 = vmatprep.mubr.bf16.mxu1 %v1749_v5 }
 0x1b2   :  { %1145 = vmatmul.mubr.bf16.vlgmr.msra.gmra.mxu0 %v2158_v6  ;;  %1186 = vmatmul.mubr.bf16.vlgmr.msra.gmra.mxu1 %v2158_v6 }
 0x1b3   :  { %1195 = vmatpush1.bf16.msra.mxu0 %v1680_v3  ;;  %1512 = vmatpush3.bf16.msra.mxu1 %v1684_v4 }
 0x1b4   :  { %1226 = vmatprep.mubr.bf16.mxu0 %v1749_v5  ;;  %1267 = vmatprep.mubr.bf16.mxu1 %v1749_v5 }
 0x1b5   :  { %1196 = vmatprep.subr.bf16.mxu0 %v1687_v7  ;;  %1513 = vmatprep.subr.bf16.mxu1 %v1688_v8 }
 0x1b7   :  { %1197 = vmatpush1.bf16.msra.mxu0 %v1685_v9  ;;  %1514 = vmatpush3.bf16.msra.mxu1 %v1689_v10 }
 0x1b8   :  { %1198 = vmatprep.subr.bf16.mxu0 %v1692_v11  ;;  %1515 = vmatprep.subr.bf16.mxu1 %v1693_v12  ;;  %v1313_v12 = vunpack.c.l.s4 %v1789_v63 }
 0x1bb   :  { %1199 = vmatpush1.bf16.msra.mxu0 %v1690_v13  ;;  %1516 = vmatpush3.bf16.msra.mxu1 %v1694_v14 }
 0x1bc   :  { %1200 = vmatprep.subr.bf16.mxu0 %v1697_v15  ;;  %1517 = vmatprep.subr.bf16.mxu1 %v1698_v16  ;;  %v1314_v16 = vunpack.c.0.s8 %v1313_v12 }
 0x1bf   :  { %1201 = vmatpush1.bf16.msra.mxu0 %v1695_v17  ;;  %1518 = vmatpush3.bf16.msra.mxu1 %v1699_v18 }
 0x1c0   :  { %1202 = vmatprep.subr.bf16.mxu0 %v1702_v19  ;;  %1519 = vmatprep.subr.bf16.mxu1 %v1703_v20 }
 0x1c3   :  { %1203 = vmatpush1.bf16.msra.mxu0 %v1700_v21  ;;  %1520 = vmatpush3.bf16.msra.mxu1 %v1704_v22 }
 0x1c4   :  { %1204 = vmatprep.subr.bf16.mxu0 %v1707_v23  ;;  %1521 = vmatprep.subr.bf16.mxu1 %v1708_v24  ;;  %v1317_v24 = vsub.s32 %v1314_v16, %v2005_v60 }
 0x1c7   :  { %1205 = vmatpush1.bf16.msra.mxu0 %v1705_v25  ;;  %1522 = vmatpush3.bf16.msra.mxu1 %v1709_v26 }
 0x1c8   :  { %1206 = vmatprep.subr.bf16.mxu0 %v1712_v27  ;;  %1523 = vmatprep.subr.bf16.mxu1 %v1713_v28 }
 0x1cb   :  { %1207 = vmatpush1.bf16.msra.mxu0 %v1710_v29  ;;  %1524 = vmatpush3.bf16.msra.mxu1 %v1714_v30 }
 0x1cc   :  { %1208 = vmatprep.subr.bf16.mxu0 %v1717_v31  ;;  %1525 = vmatprep.subr.bf16.mxu1 %v1718_v32 }
 0x1cf   :  { %1209 = vmatpush1.bf16.msra.mxu0 %v1715_v33  ;;  %1526 = vmatpush3.bf16.msra.mxu1 %v1719_v34 }
 0x1d0   :  { %1210 = vmatprep.subr.bf16.mxu0 %v1722_v35 }
 0x1d2   :  { %1268 = vmatmul.mubr.bf16.vlgmr.msra.gmra.mxu1 %v2158_v6 }
 0x1d3   :  { %1211 = vmatpush2.bf16.msra.mxu0 %v1720_v36  ;;  %v527_v36 = vsub.s32 6, %v2005_v60 }
 0x1d4   :  { %1212 = vmatprep.subr.bf16.mxu0 %v1725_v37 }
 0x1d5   :  { %v528_v37 = vrot.slane %v499_v52, %v527_v36 }
 0x1d7   :  { %1213 = vmatpush2.bf16.msra.mxu0 %v1723_v38 }
 0x1d8   :  { %1214 = vmatprep.subr.bf16.mxu0 %v1728_v39  ;;  %v519_v39 = vsub.s32 4, %v2005_v60 }
 0x1db   :  { %1215 = vmatpush2.bf16.msra.mxu0 %v1726_v40 }
 0x1dc   :  { %1216 = vmatprep.subr.bf16.mxu0 %v1731_v41  ;;  %v523_v41 = vsub.s32 5, %v2005_v60 }
 0x1df   :  { %1217 = vmatpush2.bf16.msra.mxu0 %v1729_v42  ;;  %v520_v42 = vrot.slane %v499_v52, %v519_v39 }
 0x1e0   :  { %1218 = vmatprep.subr.bf16.mxu0 %v1734_v43 }
 0x1e3   :  { %1219 = vmatpush2.bf16.msra.mxu0 %v1732_v44  ;;  %v524_v44 = vrot.slane %v499_v52, %v523_v41 }
 0x1e4   :  { %1220 = vmatprep.subr.bf16.mxu0 %v1737_v45 }
 0x1e7   :  { %1221 = vmatpush2.bf16.msra.mxu0 %v1735_v46 }
 0x1e8   :  { %1222 = vmatprep.subr.bf16.mxu0 %v1740_v47 }
 0x1eb   :  { %1223 = vmatpush2.bf16.msra.mxu0 %v1738_v48 }
 0x1ec   :  { %1224 = vmatprep.subr.bf16.mxu0 %v1743_v49 }
 0x1ef   :  { %1225 = vmatpush2.bf16.msra.mxu0 %v1741_v50 }
 0x1f2   :  { %1227 = vmatmul.mubr.bf16.vlgmr.msra.gmra.mxu0 %v2158_v6 }
 0x272   :  { %v1146_v58 = vpop.f32.mrf.mxu0  ;;  %v1187_v59 = vpop.f32.mrf.mxu1 }
 0x273   :  { %v1147_v62 = vadd.f32 %v1146_v58, %v504_v54  ;;  %v1188_v0 = vadd.f32 %v1187_v59, %v512_v55 }
 0x274   :  { %v1148_v1 = vpop.f32.mrf.mxu0  ;;  %v1189_v2 = vpop.f32.mrf.mxu1 }
 0x275   :  { %v1275_v3 = vmul.f32 0.5, %v1147_v62  ;;  %v1277_v4 = vmul.f32 0.5, %v1188_v0  ;;  %v1149_v5 = vadd.f32 %v1148_v1, %v508_v56  ;;  %v1190_v6 = vadd.f32 %v1189_v2, %v516_v57 }
 0x276   :  { %v1150_v7 = vpop.f32.mrf.mxu0  ;;  %v1191_v8 = vpop.f32.mrf.mxu1 }
 0x277   :  { %1752 = vtanh.f32 %v1275_v3  ;;  %v1276_v9 = vmul.f32 0.5, %v1149_v5  ;;  %v1278_v10 = vmul.f32 0.5, %v1190_v6 }
 0x278   :  { %1754 = vtanh.f32 %v1277_v4  ;;  %v1151_v61 = vpop.f32.mrf.mxu0  ;;  %v1192_v11 = vpop.f32.mrf.mxu1 }
 0x279   :  { %1756 = vtanh.f32 %v1276_v9 }
 0x27a   :  { %1758 = vtanh.f32 %v1278_v10 }
 0x284   :  { %v1753_v13 = vpop.eup %1752 }
 0x285   :  { %v1755_v14 = vpop.eup %1754  ;;  %v1289_v15 = vmul.f32 0.5, %v1753_v13 }
 0x286   :  { %v1757_v17 = vpop.eup %1756  ;;  %v1291_v18 = vmul.f32 0.5, %v1755_v14 }
 0x287   :  { %v1759_v19 = vpop.eup %1758  ;;  %v1290_v20 = vmul.f32 0.5, %v1757_v17  ;;  %v1296_v22 = vadd.f32 0.5, %v1289_v15 }
 0x288   :  { %v1292_v21 = vmul.f32 0.5, %v1759_v19  ;;  %v1298_v25 = vadd.f32 0.5, %v1291_v18 }
 0x289   :  { %v1297_v23 = vadd.f32 0.5, %v1290_v20 }
 0x28a   :  { %v1299_v26 = vadd.f32 0.5, %v1292_v21 }
 0x28b   :  { %v1310_v27 = vcombine.low %v1296_v22, %v1297_v23 }
 0x28c   :  { %v1311_v28 = vcombine.low %v1298_v25, %v1299_v26 }
 0x28d   :  { %v1318_v29 = vrot.slane %v1310_v27, %v1317_v24 }
 0x28e   :  { %v1325_v30 = vrot.slane %v1311_v28, %v1317_v24 }
 0x290   :  { %v1326_v31 = vcombine.low %v1318_v29, %v1325_v30 }
 0x292   :  { %v1527_v32 = vpop.f32.mrf.mxu1  ;;  %1345 = vst [vmem:[#allocation2] sm:$0xff] %v1326_v31 }
 0x294   :  { %v1528_v33 = vpop.f32.mrf.mxu1 }
 0x295   :  { %v1529_v38 = vadd.f32 %v1528_v33, %v1527_v32 }
 0x296   :  { %v1530_v34 = vpop.f32.mrf.mxu1 }
 0x297   :  { %v1270_v40 = vadd.f32 %v1529_v38, %v528_v37 }
 0x298   :  { %v1531_v35 = vpop.f32.mrf.mxu1 }
 0x299   :  { %v1281_v43 = vmul.f32 0.5, %v1270_v40 }
 0x29b   :  { %1760 = vtanh.f32 %v1281_v43 }
 0x2a8   :  { %v1761_v54 = vpop.eup %1760 }
 0x2a9   :  { %v1295_v56 = vmul.f32 0.5, %v1761_v54 }
 0x2ab   :  { %v1302_v52 = vadd.f32 0.5, %v1295_v56 }
 0x2ad   :  { %v1341_v2 = vrot.slane %v1302_v52, %v1317_v24 }
 0x2b2   :  { %v1228_v45 = vpop.f32.mrf.mxu0 }
 0x2b3   :  { %v1229_v46 = vadd.f32 %v1228_v45, %v520_v42 }
 0x2b4   :  { %v1230_v47 = vpop.f32.mrf.mxu0 }
 0x2b5   :  { %v1279_v48 = vmul.f32 0.5, %v1229_v46  ;;  %v1231_v49 = vadd.f32 %v1230_v47, %v524_v44 }
 0x2b6   :  { %v1232_v50 = vpop.f32.mrf.mxu0 }
 0x2b7   :  { %1762 = vtanh.f32 %v1279_v48  ;;  %v1280_v51 = vmul.f32 0.5, %v1231_v49 }
 0x2b8   :  { %v1233_v53 = vpop.f32.mrf.mxu0 }
 0x2b9   :  { %1764 = vtanh.f32 %v1280_v51 }
 0x2c4   :  { %v1763_v55 = vpop.eup %1762 }
 0x2c5   :  { %v1293_v57 = vmul.f32 0.5, %v1763_v55 }
 0x2c6   :  { %v1765_v58 = vpop.eup %1764 }
 0x2c7   :  { %v1294_v60 = vmul.f32 0.5, %v1765_v58  ;;  %v1300_v59 = vadd.f32 0.5, %v1293_v57 }
 0x2c9   :  { %v1301_v62 = vadd.f32 0.5, %v1294_v60 }
 0x2cb   :  { %v1327_v0 = vcombine.low %v1300_v59, %v1301_v62 }
 0x2cd   :  { %v1334_v1 = vrot.slane %v1327_v0, %v1317_v24 }
 0x2cf   :  { %v1342_v3 = vcombine.low %v1334_v1, %v1341_v2 }
 0x2d1   :  { %1351 = vst.msk [vmem:[#allocation2 + $0x8] sm:$0x3f] %vm1350_vm5, %v1342_v3 }
 0x2d2   :  { %1777 = shalt.err (!%p1774_p4)
}
 0x2d3   :  { %1361 = dma.vmem_to_hbm [thread:$0]  %s1359_s6, 224, %s2317_s7, [#allocation3]  }
 0x2d4   :  { %1786 = dma.done.wait [#allocation3], 224  }
 0x2d5   :  { %1787 = vsyncadd [#allocation3], 4294967072 }
 0x2d6   :  { %1365 = vsyncpa [#allocation3], 1 }

</bundles_post_ra>
